<compile_context>
chip_gen: v6e
topology: v6e:2x2x1
jax: 0.10.0
libtpu: 0.0.40
codegen_flags: <defaults>
</compile_context>

<pallas_src>
import functools

import jax
import jax.numpy as jnp
from jax.experimental import pallas as pl
from jax.experimental.pallas import tpu as pltpu


def _round_up(x, m):
    return ((x + m - 1) // m) * m


def _choose_tiles(n):
    """Row tile, K tile and padded node count (all multiples of 128)."""
    n128 = _round_up(max(n, 1), 128)
    tm = 128
    # Cap the K tile so a double-buffered (TM, TK) bf16 A tile stays tiny even
    # under v7x's 64 MiB VMEM (128x512 bf16 = 128 KiB per buffer).
    tk = 512 if n128 >= 512 else n128
    n_pad = _round_up(n128, tk)
    return tm, tk, n_pad


def _pad2(x, rows, cols):
    return jnp.pad(x, ((0, rows - x.shape[0]), (0, cols - x.shape[1])))


def sage_conv_kernel(a_ref, xn_ref, xs_ref, inv_ref, wl_ref, wr_ref, b_ref,
                     o_ref, acc_ref, *, apply_relu):
    """One SAGEConv layer. grid = (row tiles [parallel], K tiles [reduction])."""
    k = pl.program_id(1)

    @pl.when(k == 0)
    def _():
        acc_ref[...] = jnp.zeros_like(acc_ref)

    # neighbor-sum accumulation: (TM, TK) bf16 @ (TK, Fp) bf16 -> f32 (TM, Fp)
    acc_ref[...] += jnp.dot(a_ref[...], xn_ref[...],
                            preferred_element_type=jnp.float32)

    @pl.when(k == pl.num_programs(1) - 1)
    def _():
        # mean = sum * 1/deg (exact f32 scale), then both projections + bias.
        agg = (acc_ref[...] * inv_ref[...]).astype(jnp.bfloat16)
        out = (
            jnp.dot(agg, wl_ref[...], preferred_element_type=jnp.float32)
            + jnp.dot(xs_ref[...], wr_ref[...], preferred_element_type=jnp.float32)
            + b_ref[...]
        )
        if apply_relu:
            out = jnp.maximum(out, 0.0)
        o_ref[...] = out.astype(o_ref.dtype)


def sage_conv(adj, inv_deg, x, w_l, w_r, b, *, out_dtype, tm, tk, apply_relu):
    """Single SAGEConv layer as one tiled pallas_call.

    adj     : (Np, Np) bf16 edge-count adjacency (row i = messages into node i)
    inv_deg : (Np, 1)  f32 inverse in-degree (0 for isolated / padded rows)
    x       : (Np, Fp) bf16 node features (padded, lane-dense)
    w_l/w_r : (Fp, Hp) bf16 neighbor / self projection weights (padded)
    b       : (1, Hp)  f32 bias (neighbor branch only, as in PyG SAGEConv)
    """
    n_pad = adj.shape[0]
    fp = x.shape[1]
    hp = w_l.shape[1]
    grid = (n_pad // tm, n_pad // tk)

    kernel = functools.partial(sage_conv_kernel, apply_relu=apply_relu)
    return pl.pallas_call(
        kernel,
        out_shape=jax.ShapeDtypeStruct((n_pad, hp), out_dtype),
        grid_spec=pltpu.PrefetchScalarGridSpec(
            num_scalar_prefetch=0,
            grid=grid,
            in_specs=[
                pl.BlockSpec((tm, tk), lambda i, k: (i, k)),   # A tile
                pl.BlockSpec((tk, fp), lambda i, k: (k, 0)),   # X (neighbor rows)
                pl.BlockSpec((tm, fp), lambda i, k: (i, 0)),   # X (self rows, pinned over k)
                pl.BlockSpec((tm, 1), lambda i, k: (i, 0)),    # 1/deg (pinned over k)
                pl.BlockSpec((fp, hp), lambda i, k: (0, 0)),   # W_l (resident)
                pl.BlockSpec((fp, hp), lambda i, k: (0, 0)),   # W_r (resident)
                pl.BlockSpec((1, hp), lambda i, k: (0, 0)),    # bias (resident)
            ],
            out_specs=pl.BlockSpec((tm, hp), lambda i, k: (i, 0)),
            scratch_shapes=[pltpu.VMEM((tm, fp), jnp.float32)],
        ),
        compiler_params=pltpu.CompilerParams(
            dimension_semantics=("parallel", "arbitrary")),
    )(adj, x, x, inv_deg, w_l, w_r, b)


def build_adjacency(edge_index, num_nodes, n_pad):
    """Padded dense message-count adjacency (bf16) + f32 inverse in-degree."""
    src, dst = edge_index[0], edge_index[1]
    a = jnp.zeros((n_pad, n_pad), jnp.float32).at[dst, src].add(1.0)
    deg = a.sum(axis=1, keepdims=True)
    inv = jnp.where(deg > 0, 1.0 / deg, 0.0).astype(jnp.float32)
    # TODO(synk): for large sparse graphs replace this dense O(N^2) adjacency
    # with a CSR + PrefetchScalarGridSpec gather/segment-sum aggregation.
    return a.astype(jnp.bfloat16), inv


def gnn_layer_forward(x, edge_index, params):
    """GNNLayer.forward with sageMode='GraphSAGE', layer_size=2."""
    n, f = x.shape
    h_feats = params["wl1"].shape[1]
    out_feats = params["wl2"].shape[1]

    tm, tk, n_pad = _choose_tiles(n)
    fp = _round_up(f, 128)
    hp = _round_up(h_feats, 128)
    op = _round_up(out_feats, 128)

    adj, inv_deg = build_adjacency(edge_index, n, n_pad)
    xp = _pad2(x, n_pad, fp).astype(jnp.bfloat16)

    wl1 = _pad2(params["wl1"], fp, hp).astype(jnp.bfloat16)
    wr1 = _pad2(params["wr1"], fp, hp).astype(jnp.bfloat16)
    b1 = jnp.pad(params["b1"], (0, hp - h_feats)).reshape(1, hp).astype(jnp.float32)
    wl2 = _pad2(params["wl2"], hp, op).astype(jnp.bfloat16)
    wr2 = _pad2(params["wr2"], hp, op).astype(jnp.bfloat16)
    b2 = jnp.pad(params["b2"], (0, op - out_feats)).reshape(1, op).astype(jnp.float32)

    # sage1 (no activation between layers, per the reference forward).
    # Output stays padded + bf16 so it feeds layer 2 directly.
    h = sage_conv(adj, inv_deg, xp, wl1, wr1, b1,
                  out_dtype=jnp.bfloat16, tm=tm, tk=tk, apply_relu=False)
    # layer_size == 2 -> no sagex layers
    # TODO(synk): when the adjacency row-stripe fits VMEM, fuse both layers
    # (and keep A resident) into a single pallas_call to halve A's HBM reads.
    out_p = sage_conv(adj, inv_deg, h, wl2, wr2, b2,
                      out_dtype=jnp.float32, tm=tm, tk=tk, apply_relu=True)
    return out_p[:n, :out_feats]


def reference_forward(x, edge_index, params):
    """Pure-JAX reference mirroring the kernel's bf16/f32 dtype handling."""
    n = x.shape[0]
    src, dst = edge_index[0], edge_index[1]
    a = jnp.zeros((n, n), jnp.float32).at[dst, src].add(1.0)
    deg = a.sum(axis=1, keepdims=True)
    inv = jnp.where(deg > 0, 1.0 / deg, 0.0)
    ab = a.astype(jnp.bfloat16)

    def conv(xin, wl, wr, b, relu):
        xb = xin.astype(jnp.bfloat16)
        agg = jnp.dot(ab, xb, preferred_element_type=jnp.float32) * inv
        out = (
            jnp.dot(agg.astype(jnp.bfloat16), wl.astype(jnp.bfloat16),
                    preferred_element_type=jnp.float32)
            + jnp.dot(xb, wr.astype(jnp.bfloat16),
                      preferred_element_type=jnp.float32)
            + b
        )
        return jnp.maximum(out, 0.0) if relu else out

    h = conv(x, params["wl1"], params["wr1"], params["b1"], False)
    h = h.astype(jnp.bfloat16).astype(jnp.float32)   # layer-1 output is bf16
    return conv(h, params["wl2"], params["wr2"], params["b2"], True)


def kaiming_normal(key, fan_in, fan_out):
    # matches nn.init.kaiming_normal_ (fan_in mode, gain=sqrt(2))
    std = jnp.sqrt(2.0 / fan_in)
    return std * jax.random.normal(key, (fan_in, fan_out), jnp.float32)


if __name__ == "__main__":
    # Small deterministic problem: 16 nodes, in_feats=8, h_feats=32, out_feats=16
    N, E = 16, 48
    IN_FEATS, H_FEATS, OUT_FEATS = 8, 32, 16

    key = jax.random.PRNGKey(0)
    kx, ke_src, ke_dst, k1, k2, k3, k4 = jax.random.split(key, 7)

    x = jax.random.normal(kx, (N, IN_FEATS), jnp.float32)
    edge_index = jnp.stack(
        [
            jax.random.randint(ke_src, (E,), 0, N),
            jax.random.randint(ke_dst, (E,), 0, N),
        ],
        axis=0,
    )  # (2, E), row 0 = source, row 1 = target (PyG convention)

    # Parameters (2-D weights kaiming-normal, biases zero — matches init_params,
    # which only re-initializes 2-D params).
    params = {
        "wl1": kaiming_normal(k1, IN_FEATS, H_FEATS),
        "wr1": kaiming_normal(k2, IN_FEATS, H_FEATS),
        "b1": jnp.zeros((H_FEATS,), jnp.float32),
        "wl2": kaiming_normal(k3, H_FEATS, OUT_FEATS),
        "wr2": kaiming_normal(k4, H_FEATS, OUT_FEATS),
        "b2": jnp.zeros((OUT_FEATS,), jnp.float32),
    }

    out = gnn_layer_forward(x, edge_index, params)
    jax.block_until_ready(out)

    ref = reference_forward(x, edge_index, params)
    assert out.shape == (N, OUT_FEATS)
    assert jnp.allclose(out, ref, atol=2e-2, rtol=2e-2), (
        float(jnp.max(jnp.abs(out - ref))))

    print("KERNEL_OK")
</pallas_src>

<mosaic_0001>
module attributes {stable_mosaic.version = 11 : i64} {
  func.func @sage_conv_kernel(%arg0: i32, %arg1: i32, %arg2: memref<128x128xbf16, #tpu.memory_space<vmem>>, %arg3: memref<128x128xbf16, #tpu.memory_space<vmem>>, %arg4: memref<128x128xbf16, #tpu.memory_space<vmem>>, %arg5: memref<128x1xf32, #tpu.memory_space<vmem>>, %arg6: memref<128x128xbf16, #tpu.memory_space<vmem>>, %arg7: memref<128x128xbf16, #tpu.memory_space<vmem>>, %arg8: memref<1x128xf32, #tpu.memory_space<vmem>>, %arg9: memref<128x128xbf16, #tpu.memory_space<vmem>>, %arg10: memref<128x128xf32, #tpu.memory_space<vmem>>) attributes {dimension_semantics = [#tpu.dimension_semantics<parallel>, #tpu.dimension_semantics<arbitrary>], iteration_bounds = array<i64: 1, 1>, scalar_prefetch = 0 : i64, scratch_operands = 1 : i64, tpu.core_type = #tpu.core_type<tc>, window_params = [{transform_indices = @transform_0, window_bounds = array<i64: 128, 128>}, {transform_indices = @transform_1, window_bounds = array<i64: 128, 128>}, {transform_indices = @transform_2, window_bounds = array<i64: 128, 128>}, {transform_indices = @transform_3, window_bounds = array<i64: 128, 1>}, {pipeline_mode = #tpu.pipeline_mode<synchronous>, transform_indices = @transform_4, window_bounds = array<i64: 128, 128>}, {pipeline_mode = #tpu.pipeline_mode<synchronous>, transform_indices = @transform_5, window_bounds = array<i64: 128, 128>}, {pipeline_mode = #tpu.pipeline_mode<synchronous>, transform_indices = @transform_6, window_bounds = array<i64: 1, 128>}, {transform_indices = @transform_7, window_bounds = array<i64: 128, 128>}]} {
    %c0_i32 = arith.constant 0 : i32
    %0 = arith.cmpi eq, %arg1, %c0_i32 : i32
    %1 = arith.extui %0 : i1 to i32
    %c0_i32_0 = arith.constant 0 : i32
    %2 = arith.cmpi ne, %1, %c0_i32_0 : i32
    scf.if %2 {
      %cst_10 = arith.constant 0.000000e+00 : f32
      %12 = vector.broadcast %cst_10 : f32 to vector<128x128xf32>
      %c0_11 = arith.constant 0 : index
      %c0_12 = arith.constant 0 : index
      %13 = vector.load %arg10[%c0_11, %c0_12] : memref<128x128xf32, #tpu.memory_space<vmem>>, vector<128x128xf32>
      tpu.vector_store %arg10[%c0_11, %c0_12], %12 {strides = array<i32>} : memref<128x128xf32, #tpu.memory_space<vmem>>, vector<128x128xf32>,
    } else {
    }
    %c0 = arith.constant 0 : index
    %c0_1 = arith.constant 0 : index
    %3 = vector.load %arg10[%c0, %c0_1] : memref<128x128xf32, #tpu.memory_space<vmem>>, vector<128x128xf32>
    %c0_2 = arith.constant 0 : index
    %c0_3 = arith.constant 0 : index
    %4 = vector.load %arg2[%c0_2, %c0_3] : memref<128x128xbf16, #tpu.memory_space<vmem>>, vector<128x128xbf16>
    %c0_4 = arith.constant 0 : index
    %c0_5 = arith.constant 0 : index
    %5 = vector.load %arg3[%c0_4, %c0_5] : memref<128x128xbf16, #tpu.memory_space<vmem>>, vector<128x128xbf16>
    %cst = arith.constant dense<0.000000e+00> : vector<128x128xf32>
    %6 = tpu.matmul %4, %5, %cst {dimension_numbers = #tpu.dot_dimension_numbers<[1], [0], [0], [1], [0, 0, 1, 1], [], []>} : vector<128x128xbf16>, vector<128x128xbf16>, vector<128x128xf32> -> vector<128x128xf32>
    %7 = arith.addf %3, %6 : vector<128x128xf32>
    %c0_6 = arith.constant 0 : index
    %c0_7 = arith.constant 0 : index
    %8 = vector.load %arg10[%c0_6, %c0_7] : memref<128x128xf32, #tpu.memory_space<vmem>>, vector<128x128xf32>
    tpu.vector_store %arg10[%c0_6, %c0_7], %7 {strides = array<i32>} : memref<128x128xf32, #tpu.memory_space<vmem>>, vector<128x128xf32>,
    %c0_i32_8 = arith.constant 0 : i32
    %9 = arith.cmpi eq, %arg1, %c0_i32_8 : i32
    %10 = arith.extui %9 : i1 to i32
    %c0_i32_9 = arith.constant 0 : i32
    %11 = arith.cmpi ne, %10, %c0_i32_9 : i32
    scf.if %11 {
      %c0_10 = arith.constant 0 : index
      %c0_11 = arith.constant 0 : index
      %12 = vector.load %arg10[%c0_10, %c0_11] : memref<128x128xf32, #tpu.memory_space<vmem>>, vector<128x128xf32>
      %c0_12 = arith.constant 0 : index
      %c0_13 = arith.constant 0 : index
      %13 = vector.load %arg5[%c0_12, %c0_13] : memref<128x1xf32, #tpu.memory_space<vmem>>, vector<128x1xf32>
      %14 = vector.broadcast %13 : vector<128x1xf32> to vector<128x128xf32>
      %15 = arith.mulf %12, %14 : vector<128x128xf32>
      %16 = arith.truncf %15 : vector<128x128xf32> to vector<128x128xbf16>
      %c0_14 = arith.constant 0 : index
      %c0_15 = arith.constant 0 : index
      %17 = vector.load %arg6[%c0_14, %c0_15] : memref<128x128xbf16, #tpu.memory_space<vmem>>, vector<128x128xbf16>
      %cst_16 = arith.constant dense<0.000000e+00> : vector<128x128xf32>
      %18 = tpu.matmul %16, %17, %cst_16 {dimension_numbers = #tpu.dot_dimension_numbers<[1], [0], [0], [1], [0, 0, 1, 1], [], []>} : vector<128x128xbf16>, vector<128x128xbf16>, vector<128x128xf32> -> vector<128x128xf32>
      %c0_17 = arith.constant 0 : index
      %c0_18 = arith.constant 0 : index
      %19 = vector.load %arg4[%c0_17, %c0_18] : memref<128x128xbf16, #tpu.memory_space<vmem>>, vector<128x128xbf16>
      %c0_19 = arith.constant 0 : index
      %c0_20 = arith.constant 0 : index
      %20 = vector.load %arg7[%c0_19, %c0_20] : memref<128x128xbf16, #tpu.memory_space<vmem>>, vector<128x128xbf16>
      %cst_21 = arith.constant dense<0.000000e+00> : vector<128x128xf32>
      %21 = tpu.matmul %19, %20, %cst_21 {dimension_numbers = #tpu.dot_dimension_numbers<[1], [0], [0], [1], [0, 0, 1, 1], [], []>} : vector<128x128xbf16>, vector<128x128xbf16>, vector<128x128xf32> -> vector<128x128xf32>
      %22 = arith.addf %18, %21 : vector<128x128xf32>
      %c0_22 = arith.constant 0 : index
      %c0_23 = arith.constant 0 : index
      %23 = vector.load %arg8[%c0_22, %c0_23] : memref<1x128xf32, #tpu.memory_space<vmem>>, vector<1x128xf32>
      %24 = vector.broadcast %23 : vector<1x128xf32> to vector<128x128xf32>
      %25 = arith.addf %22, %24 : vector<128x128xf32>
      %26 = arith.truncf %25 : vector<128x128xf32> to vector<128x128xbf16>
      %c0_24 = arith.constant 0 : index
      %c0_25 = arith.constant 0 : index
      %27 = vector.load %arg9[%c0_24, %c0_25] : memref<128x128xbf16, #tpu.memory_space<vmem>>, vector<128x128xbf16>
      tpu.vector_store %arg9[%c0_24, %c0_25], %26 {strides = array<i32>} : memref<128x128xbf16, #tpu.memory_space<vmem>>, vector<128x128xbf16>,
    } else {
    }
    return
  }
  func.func @transform_0(%arg0: i32, %arg1: i32) -> (i32, i32) {
    %c0_i32 = arith.constant 0 : i32
    return %arg0, %arg1 : i32, i32
  }
  func.func @transform_1(%arg0: i32, %arg1: i32) -> (i32, i32) {
    %c0_i32 = arith.constant 0 : i32
    %c0_i32_0 = arith.constant 0 : i32
    return %arg1, %c0_i32 : i32, i32
  }
  func.func @transform_2(%arg0: i32, %arg1: i32) -> (i32, i32) {
    %c0_i32 = arith.constant 0 : i32
    %c0_i32_0 = arith.constant 0 : i32
    return %arg0, %c0_i32 : i32, i32
  }
  func.func @transform_3(%arg0: i32, %arg1: i32) -> (i32, i32) {
    %c0_i32 = arith.constant 0 : i32
    %c0_i32_0 = arith.constant 0 : i32
    return %arg0, %c0_i32 : i32, i32
  }
  func.func @transform_4(%arg0: i32, %arg1: i32) -> (i32, i32) {
    %c0_i32 = arith.constant 0 : i32
    %c0_i32_0 = arith.constant 0 : i32
    %c0_i32_1 = arith.constant 0 : i32
    return %c0_i32, %c0_i32_0 : i32, i32
  }
  func.func @transform_5(%arg0: i32, %arg1: i32) -> (i32, i32) {
    %c0_i32 = arith.constant 0 : i32
    %c0_i32_0 = arith.constant 0 : i32
    %c0_i32_1 = arith.constant 0 : i32
    return %c0_i32, %c0_i32_0 : i32, i32
  }
  func.func @transform_6(%arg0: i32, %arg1: i32) -> (i32, i32) {
    %c0_i32 = arith.constant 0 : i32
    %c0_i32_0 = arith.constant 0 : i32
    %c0_i32_1 = arith.constant 0 : i32
    return %c0_i32, %c0_i32_0 : i32, i32
  }
  func.func @transform_7(%arg0: i32, %arg1: i32) -> (i32, i32) {
    %c0_i32 = arith.constant 0 : i32
    %c0_i32_0 = arith.constant 0 : i32
    return %arg0, %c0_i32 : i32, i32
  }
}

</mosaic_0001>

<bundles_post_ra>
// kernel: tpu_custom_call.1
= control target key start
LH: loop header
LB: loop body
LE: loop exit
PB: predicated region body
PF: predicated region fallthrough
CT: control target
= control target key end

     0   :  { %12 = vsyncpa [#allocation4], 0  ;;  %s1617_s0 = inlined_call_operand.vmem [shape: bf16[128,128], index: 0, kind: input, shape index: {}]   ;;  %s1618_s1 = inlined_call_operand.vmem [shape: bf16[128,128], index: 1, kind: input, shape index: {}]   ;;  %s1619_s2 = inlined_call_operand.hbm [shape: bf16[128,128], index: 2, kind: input, shape index: {}]   ;;  %s1620_s3 = inlined_call_operand.vmem [shape: f32[128,1], index: 3, kind: input, shape index: {}]   ;;  %s1621_s4 = inlined_call_operand.hbm [shape: bf16[128,128], index: 4, kind: input, shape index: {}]   ;;  %s1622_s5 = inlined_call_operand.hbm [shape: bf16[128,128], index: 5, kind: input, shape index: {}]   ;;  %s1623_s6 = inlined_call_operand.vmem [shape: f32[1,128], index: 6, kind: input, shape index: {}]   ;;  %s1624_s7 = inlined_call_operand.hbm [shape: bf16[128,128], index: 7, kind: output, shape index: {}]  }
   0x1   :  { %13 = vsyncpa [#allocation7], 0 }
   0x2   :  { %14 = vsyncpa [#allocation5], 0  ;;  %s1423_s24 = smov [#allocation6]   ;;  %s1424_s26 = smov [#allocation3]  }
   0x3   :  { %s38_s25 = sshll.u32 %s1423_s24, 4  ;;  %s24_s27 = sshll.u32 %s1424_s26, 4  ;;  %s39_s25 = int_to_ptr.vmem [resolvable:$true] %s38_s25  ;;  %s25_s27 = int_to_ptr.vmem [resolvable:$true] %s24_s27 }
   0x4   :  { %s1345_s28 = scalar_lea.vmem %s39_s25, 1024  ;;  %p1350_p1 = scmp.lt.s32.totalorder %s39_s25, %s39_s25 }
   0x5   :  { %p1346_p0 = scmp.ne.s32.totalorder %s39_s25, %s1345_s28  ;;  %p1351_p2 = scmp.lt.s32.totalorder %s1345_s28, %s1345_s28 }
   0x7   :  { %p1352_p3 = por %p1351_p2, %p1350_p1 }
   0x9   :  { %p1353_p4 = pnand %p1352_p3, %p1346_p0 }
   0xb   :  { %1356 = shalt.err (!%p1353_p4)
}
   0xc   :  { %s1425_s29 = smov 64   ;;  %s1426_s30 = smov 4  }
   0xd   :  { %44 = dma.hbm_to_vmem [thread:$0]  %s1621_s4, 1024, %s39_s25, [#allocation7], %s1425_s29, %s1425_s29, %s1426_s30  }
   0xe   :  { %s1365_s10 = scalar_lea.vmem %s25_s27, 1024  ;;  %p1370_p6 = scmp.lt.s32.totalorder %s25_s27, %s25_s27 }
   0xf   :  { %p1366_p5 = scmp.ne.s32.totalorder %s25_s27, %s1365_s10  ;;  %p1371_p7 = scmp.lt.s32.totalorder %s1365_s10, %s1365_s10 }
  0x11   :  { %p1372_p8 = por %p1371_p7, %p1370_p6 }
  0x13   :  { %p1373_p9 = pnand %p1372_p8, %p1366_p5 }
  0x15   :  { %1376 = shalt.err (!%p1373_p9)
}
  0x16   :  { %30 = dma.hbm_to_vmem [thread:$0]  %s1619_s2, 1024, %s25_s27, [#allocation4], %s1425_s29, %s1425_s29, %s1426_s30  }
  0x17   :  { %s1427_s13 = smov [#allocation8]  }
  0x18   :  { %s50_s14 = sshll.u32 %s1427_s13, 4  ;;  %s51_s14 = int_to_ptr.vmem [resolvable:$true] %s50_s14 }
  0x19   :  { %s1385_s15 = scalar_lea.vmem %s51_s14, 1024  ;;  %p1390_p11 = scmp.lt.s32.totalorder %s51_s14, %s51_s14 }
  0x1a   :  { %p1386_p10 = scmp.ne.s32.totalorder %s51_s14, %s1385_s15  ;;  %p1391_p12 = scmp.lt.s32.totalorder %s1385_s15, %s1385_s15 }
  0x1c   :  { %p1392_p13 = por %p1391_p12, %p1390_p11 }
  0x1e   :  { %p1393_p0 = pnand %p1392_p13, %p1386_p10 }
  0x20   :  { %1396 = shalt.err (!%p1393_p0)
}
  0x21   :  { %56 = dma.hbm_to_vmem [thread:$0]  %s1622_s5, 1024, %s51_s14, [#allocation7], %s1425_s29, %s1425_s29, %s1426_s30  }
  0x22   :  { %1417 = dma.done.wait [#allocation4], 1024  }
  0x23   :  { %1418 = vsyncadd [#allocation4], 4294966272 }
  0x24   :  { %1419 = dma.done.wait [#allocation7], 2048  }
  0x25   :  { %1420 = vsyncadd [#allocation7], 4294965248  ;;  %v1428_v0 = vmov 0   ;;  %v1297_v1 = vld [vmem:[%s1618_s1 + $0x38] sm:$0xff]   ;;  %v1298_v2 = vld [vmem:[%s1618_s1 + $0x30] sm:$0xff]  }
  0x26   :  { %1296 = vset.pattern.permute.xlu1 %v1428_v0  ;;  %1295 = vset.pattern.permute.xlu0 %v1428_v0  ;;  %v1299_v3 = vld [vmem:[%s1618_s1 + $0x28] sm:$0xff]   ;;  %v1300_v4 = vld [vmem:[%s1618_s1 + $0x20] sm:$0xff]   ;;  %v1301_v6 = vld [vmem:[%s1618_s1 + $0x18] sm:$0xff]  }
  0x27   :  { %1176 = vmatprep.subr.bf16.mxu0 %v1297_v1  ;;  %v1305_v5 = vld [vmem:[%s1617_s0] sm:$0xff]   ;;  %v1302_v7 = vld [vmem:[%s1618_s1 + $0x10] sm:$0xff]   ;;  %v390_v10 = vld [vmem:[%s1620_s3 + $0x48] sm:$0xff] }
  0x28   :  { %1177 = vmatpush3.bf16.msra.mxu0 %v1297_v1  ;;  %1192 = vmatprep.mubr.bf16.mxu0 %v1305_v5  ;;  %v389_v8 = vld [vmem:[%s1620_s3 + $0x40] sm:$0xff]  ;;  %v382_v11 = vld [vmem:[%s1620_s3 + $0x8] sm:$0xff]  ;;  %v384_v13 = vld [vmem:[%s1620_s3 + $0x18] sm:$0xff] }
  0x29   :  { %1178 = vmatprep.subr.bf16.mxu0 %v1298_v2  ;;  %v381_v9 = vld [vmem:[%s1620_s3] sm:$0xff]  ;;  %439 = vperm.xlu1 %1296, %v389_v8   ;;  %v1303_v12 = vld [vmem:[%s1618_s1 + $0x8] sm:$0xff]   ;;  %v383_v14 = vld [vmem:[%s1620_s3 + $0x10] sm:$0xff] }
  0x2a   :  { %399 = vperm.xlu0 %1295, %v381_v9   ;;  %v1313_v15 = vld [vmem:[#allocation8 + $0x38] sm:$0xff]   ;;  %v1314_v16 = vld [vmem:[#allocation8 + $0x30] sm:$0xff]   ;;  %v1304_v17 = vld [vmem:[%s1618_s1] sm:$0xff]  }
  0x2b   :  { %1208 = vmatprep.subr.bf16.mxu1 %v1313_v15  ;;  %v392_v18 = vld [vmem:[%s1620_s3 + $0x58] sm:$0xff]  ;;  %v391_v19 = vld [vmem:[%s1620_s3 + $0x50] sm:$0xff]  ;;  %v1315_v20 = vld [vmem:[#allocation8 + $0x28] sm:$0xff]  }
  0x2c   :  { %1179 = vmatpush3.bf16.msra.mxu0 %v1298_v2  ;;  %1209 = vmatpush3.bf16.msra.mxu1 %v1313_v15  ;;  %v1306_v21 = vld [vmem:[%s1617_s0 + $0x8] sm:$0xff]   ;;  %v1542_v22 = vld [vmem:[#allocation6 + $0x38] sm:$0xff]   ;;  %v1307_v23 = vld [vmem:[%s1617_s0 + $0x10] sm:$0xff]  }
  0x2d   :  { %1180 = vmatprep.subr.bf16.mxu0 %v1299_v3  ;;  %444 = vperm.xlu1 %1296, %v390_v10   ;;  %v386_v24 = vld [vmem:[%s1620_s3 + $0x28] sm:$0xff]  ;;  %v385_v25 = vld [vmem:[%s1620_s3 + $0x20] sm:$0xff]  ;;  %v1321_v30 = vld [vmem:[#allocation6 + $0x30] sm:$0xff]  }
  0x2e   :  { %404 = vperm.xlu0 %1295, %v382_v11   ;;  %1210 = vmatprep.subr.bf16.mxu1 %v1314_v16  ;;  %v1316_v26 = vld [vmem:[#allocation8 + $0x20] sm:$0xff]   ;;  %v394_v27 = vld [vmem:[%s1620_s3 + $0x68] sm:$0xff]  ;;  %v1317_v31 = vld [vmem:[#allocation8 + $0x18] sm:$0xff]  }
  0x2f   :  { %v393_v28 = vld [vmem:[%s1620_s3 + $0x60] sm:$0xff]  ;;  %v1308_v32 = vld [vmem:[%s1617_s0 + $0x18] sm:$0xff]   ;;  %v387_v34 = vld [vmem:[%s1620_s3 + $0x30] sm:$0xff] }
  0x30   :  { %1181 = vmatpush3.bf16.msra.mxu0 %v1299_v3  ;;  %1211 = vmatpush3.bf16.msra.mxu1 %v1314_v16  ;;  %v1324_v29 = vld [vmem:[#allocation3] sm:$0xff]   ;;  %v388_v33 = vld [vmem:[%s1620_s3 + $0x38] sm:$0xff]  ;;  %v1318_v36 = vld [vmem:[#allocation8 + $0x10] sm:$0xff]  }
  0x31   :  { %1182 = vmatprep.subr.bf16.mxu0 %v1300_v4  ;;  %414 = vperm.xlu1 %1296, %v384_v13   ;;  %v1309_v35 = vld [vmem:[%s1617_s0 + $0x20] sm:$0xff]   ;;  %v1323_v37 = vld [vmem:[#allocation6 + $0x28] sm:$0xff]   ;;  %v396_v38 = vld [vmem:[%s1620_s3 + $0x78] sm:$0xff] }
  0x32   :  { %409 = vperm.xlu0 %1295, %v383_v14   ;;  %1212 = vmatprep.subr.bf16.mxu1 %v1315_v20  ;;  %v395_v39 = vld [vmem:[%s1620_s3 + $0x70] sm:$0xff]  ;;  %v1320_v40 = vld [vmem:[#allocation8 + $0x8] sm:$0xff]   ;;  %v1326_v41 = vld [vmem:[#allocation6 + $0x20] sm:$0xff]  }
  0x33   :  { %1224 = vmatprep.mubr.bf16.mxu1 %v1324_v29  ;;  %v1310_v42 = vld [vmem:[%s1617_s0 + $0x28] sm:$0xff]   ;;  %v1311_v43 = vld [vmem:[%s1617_s0 + $0x30] sm:$0xff]   ;;  %v1322_v44 = vld [vmem:[#allocation8] sm:$0xff]  }
  0x34   :  { %1183 = vmatpush3.bf16.msra.mxu0 %v1300_v4  ;;  %1213 = vmatpush3.bf16.msra.mxu1 %v1315_v20  ;;  %v1327_v45 = vld [vmem:[#allocation6 + $0x18] sm:$0xff]   ;;  %v1325_v46 = vld [vmem:[#allocation3 + $0x8] sm:$0xff]   ;;  %v1328_v48 = vld [vmem:[#allocation3 + $0x10] sm:$0xff]  }
  0x35   :  { %1184 = vmatprep.subr.bf16.mxu0 %v1301_v6  ;;  %454 = vperm.xlu1 %1296, %v392_v18   ;;  %v1312_v47 = vld [vmem:[%s1617_s0 + $0x38] sm:$0xff]   ;;  %v1330_v50 = vld [vmem:[#allocation6 + $0x10] sm:$0xff]   ;;  %v1331_v51 = vld [vmem:[#allocation6 + $0x8] sm:$0xff]  }
  0x36   :  { %449 = vperm.xlu0 %1295, %v391_v19   ;;  %1214 = vmatprep.subr.bf16.mxu1 %v1316_v26  ;;  %v1329_v49 = vld [vmem:[#allocation3 + $0x18] sm:$0xff]   ;;  %v1332_v52 = vld [vmem:[#allocation3 + $0x20] sm:$0xff]   ;;  %v1333_v53 = vld [vmem:[#allocation3 + $0x28] sm:$0xff]  }
  0x37   :  { %v1334_v54 = vld [vmem:[#allocation6] sm:$0xff]   ;;  %v1335_v55 = vld [vmem:[#allocation3 + $0x30] sm:$0xff]   ;;  %v1336_v56 = vld [vmem:[#allocation3 + $0x38] sm:$0xff]  }
  0x38   :  { %1185 = vmatpush3.bf16.msra.mxu0 %v1301_v6  ;;  %1215 = vmatpush3.bf16.msra.mxu1 %v1316_v26 }
  0x39   :  { %1186 = vmatprep.subr.bf16.mxu0 %v1302_v7  ;;  %424 = vperm.xlu1 %1296, %v386_v24  }
  0x3a   :  { %419 = vperm.xlu0 %1295, %v385_v25   ;;  %1216 = vmatprep.subr.bf16.mxu1 %v1317_v31 }
  0x3c   :  { %1187 = vmatpush3.bf16.msra.mxu0 %v1302_v7  ;;  %1217 = vmatpush3.bf16.msra.mxu1 %v1317_v31 }
  0x3d   :  { %1188 = vmatprep.subr.bf16.mxu0 %v1303_v12  ;;  %464 = vperm.xlu1 %1296, %v394_v27  }
  0x3e   :  { %459 = vperm.xlu0 %1295, %v393_v28   ;;  %1218 = vmatprep.subr.bf16.mxu1 %v1318_v36 }
  0x40   :  { %1189 = vmatpush3.bf16.msra.mxu0 %v1303_v12  ;;  %1219 = vmatpush3.bf16.msra.mxu1 %v1318_v36 }
  0x41   :  { %1190 = vmatprep.subr.bf16.mxu0 %v1304_v17  ;;  %434 = vperm.xlu1 %1296, %v388_v33  }
  0x42   :  { %429 = vperm.xlu0 %1295, %v387_v34   ;;  %1220 = vmatprep.subr.bf16.mxu1 %v1320_v40 }
  0x44   :  { %1191 = vmatpush3.bf16.msra.mxu0 %v1304_v17  ;;  %1221 = vmatpush3.bf16.msra.mxu1 %v1320_v40 }
  0x45   :  { %1240 = vmatprep.subr.bf16.mxu0 %v1542_v22  ;;  %474 = vperm.xlu1 %1296, %v396_v38  }
  0x46   :  { %469 = vperm.xlu0 %1295, %v395_v39   ;;  %1222 = vmatprep.subr.bf16.mxu1 %v1322_v44 }
  0x47   :  { %1193 = vmatmul.mubr.bf16.vlgmr.msra.gmra.mxu0 %v1306_v21 }
  0x48   :  { %1196 = vmatprep.mubr.bf16.mxu0 %v1307_v23  ;;  %1241 = vmatpush3.bf16.msra.mxu0 %v1542_v22 }
  0x49   :  { %1242 = vmatprep.subr.bf16.mxu0 %v1321_v30  ;;  %1223 = vmatpush3.bf16.msra.mxu1 %v1322_v44 }
  0x4a   :  { %1272 = vmatprep.subr.bf16.mxu1 %v1542_v22 }
  0x4c   :  { %1243 = vmatpush3.bf16.msra.mxu0 %v1321_v30  ;;  %1225 = vmatmul.mubr.bf16.vlgmr.msra.gmra.mxu1 %v1325_v46 }
  0x4d   :  { %1244 = vmatprep.subr.bf16.mxu0 %v1323_v37  ;;  %1280 = vmatpush3.bf16.msra.mxu1 %v1542_v22 }
  0x4e   :  { %1228 = vmatprep.mubr.bf16.mxu1 %v1328_v48  ;;  %1273 = vmatprep.subr.bf16.mxu1 %v1321_v30 }
  0x4f   :  { %1197 = vmatmul.mubr.bf16.gmra.mxu0 %v1308_v32 }
  0x50   :  { %1200 = vmatprep.mubr.bf16.mxu0 %v1309_v35  ;;  %1245 = vmatpush3.bf16.msra.mxu0 %v1323_v37 }
  0x51   :  { %1246 = vmatprep.subr.bf16.mxu0 %v1326_v41  ;;  %1281 = vmatpush3.bf16.msra.mxu1 %v1321_v30 }
  0x52   :  { %1274 = vmatprep.subr.bf16.mxu1 %v1323_v37 }
  0x54   :  { %1247 = vmatpush3.bf16.msra.mxu0 %v1326_v41  ;;  %1229 = vmatmul.mubr.bf16.gmra.mxu1 %v1329_v49 }
  0x55   :  { %1248 = vmatprep.subr.bf16.mxu0 %v1327_v45  ;;  %1282 = vmatpush3.bf16.msra.mxu1 %v1323_v37 }
  0x56   :  { %1275 = vmatprep.subr.bf16.mxu1 %v1326_v41  ;;  %1232 = vmatprep.mubr.bf16.mxu1 %v1332_v52 }
  0x57   :  { %1201 = vmatmul.mubr.bf16.gmra.mxu0 %v1310_v42 }
  0x58   :  { %1204 = vmatprep.mubr.bf16.mxu0 %v1311_v43  ;;  %1249 = vmatpush3.bf16.msra.mxu0 %v1327_v45 }
  0x59   :  { %1283 = vmatpush3.bf16.msra.mxu1 %v1326_v41  ;;  %1250 = vmatprep.subr.bf16.mxu0 %v1330_v50 }
  0x5a   :  { %1276 = vmatprep.subr.bf16.mxu1 %v1327_v45 }
  0x5c   :  { %1251 = vmatpush3.bf16.msra.mxu0 %v1330_v50  ;;  %1233 = vmatmul.mubr.bf16.gmra.mxu1 %v1333_v53 }
  0x5d   :  { %1284 = vmatpush3.bf16.msra.mxu1 %v1327_v45  ;;  %1252 = vmatprep.subr.bf16.mxu0 %v1331_v51 }
  0x5e   :  { %1277 = vmatprep.subr.bf16.mxu1 %v1330_v50  ;;  %1236 = vmatprep.mubr.bf16.mxu1 %v1335_v55 }
  0x5f   :  { %1205 = vmatmul.mubr.bf16.gmra.mxu0 %v1312_v47 }
  0x60   :  { %1253 = vmatpush3.bf16.msra.mxu0 %v1331_v51 }
  0x61   :  { %1285 = vmatpush3.bf16.msra.mxu1 %v1330_v50  ;;  %1254 = vmatprep.subr.bf16.mxu0 %v1334_v54 }
  0x62   :  { %1278 = vmatprep.subr.bf16.mxu1 %v1331_v51 }
  0x64   :  { %1255 = vmatpush3.bf16.msra.mxu0 %v1334_v54  ;;  %1237 = vmatmul.mubr.bf16.gmra.mxu1 %v1336_v56 }
  0x65   :  { %1286 = vmatpush3.bf16.msra.mxu1 %v1331_v51 }
  0x66   :  { %1279 = vmatprep.subr.bf16.mxu1 %v1334_v54 }
  0x69   :  { %1287 = vmatpush3.bf16.msra.mxu1 %v1334_v54 }
  0xa4   :  { %v440_v57 = vpop.permute.xlu1 %439 }
  0xa5   :  { %v400_v58 = vpop.permute.xlu0 %399 }
  0xa8   :  { %v445_v59 = vpop.permute.xlu1 %444 }
  0xa9   :  { %v405_v60 = vpop.permute.xlu0 %404 }
  0xac   :  { %v415_v61 = vpop.permute.xlu1 %414 }
  0xad   :  { %v410_v62 = vpop.permute.xlu0 %409 }
  0xb0   :  { %v455_v63 = vpop.permute.xlu1 %454 }
  0xb1   :  { %v450_v0 = vpop.permute.xlu0 %449 }
  0xb4   :  { %v425_v2 = vpop.permute.xlu1 %424 }
  0xb5   :  { %v420_v4 = vpop.permute.xlu0 %419 }
  0xb8   :  { %v465_v8 = vpop.permute.xlu1 %464 }
  0xb9   :  { %v460_v13 = vpop.permute.xlu0 %459 }
  0xbc   :  { %v435_v18 = vpop.permute.xlu1 %434 }
  0xbd   :  { %v430_v21 = vpop.permute.xlu0 %429 }
  0xc0   :  { %v475_v40 = vpop.permute.xlu1 %474 }
  0xc1   :  { %v470_v43 = vpop.permute.xlu0 %469 }
 0x107   :  { %v1194_v1 = vpop.f32.mrf.mxu0 }
 0x108   :  { %v479_v11 = vmul.f32 %v1194_v1, %v410_v62  ;;  %v1593_v1 = vld [vmem:[%s1623_s6] ss:$0 sm:$0xff]  ;;  %s1429_s6 = smov [#allocation9]  }
 0x109   :  { %v267_v3 = vpop.f32.mrf.mxu0  ;;  %s995_s8 = sshll.u32 %s1429_s6, 4  ;;  %s996_s8 = int_to_ptr.vmem [resolvable:$true] %s995_s8 }
 0x10a   :  { %v477_v9 = vmul.f32 %v400_v58, %v267_v3  ;;  %s1397_s9 = scalar_lea.vmem %s996_s8, 1024  ;;  %p1402_p2 = scmp.lt.s32.totalorder %s996_s8, %s996_s8 }
 0x10b   :  { %v1195_v5 = vpop.f32.mrf.mxu0  ;;  %p1398_p1 = scmp.ne.s32.totalorder %s996_s8, %s1397_s9  ;;  %p1403_p3 = scmp.lt.s32.totalorder %s1397_s9, %s1397_s9 }
 0x10c   :  { %v480_v6 = vmul.f32 %v1195_v5, %v415_v61  ;;  %v1226_v49 = vpop.f32.mrf.mxu1 }
 0x10d   :  { %v270_v7 = vpop.f32.mrf.mxu0  ;;  %p1404_p4 = por %p1403_p3, %p1402_p2 }
 0x10e   :  { %v478_v10 = vmul.f32 %v405_v60, %v270_v7  ;;  %v494_v15 = vpack.c.bf16 %v480_v6, %v479_v11  ;;  %v679_v50 = vpop.f32.mrf.mxu1 }
 0x10f   :  { %v1198_v12 = vpop.f32.mrf.mxu0  ;;  %p1405_p5 = pnand %p1404_p4, %p1398_p1 }
 0x110   :  { %v493_v14 = vpack.c.bf16 %v478_v10, %v477_v9  ;;  %v483_v24 = vmul.f32 %v1198_v12, %v430_v21  ;;  %v1227_v51 = vpop.f32.mrf.mxu1 }
 0x111   :  { %v283_v16 = vpop.f32.mrf.mxu0 }
 0x112   :  { %1256 = vmatprep.mubr.bf16.mxu0 %v493_v14  ;;  %v481_v22 = vmul.f32 %v420_v4, %v283_v16  ;;  %v682_v52 = vpop.f32.mrf.mxu1 }
 0x113   :  { %v1199_v17 = vpop.f32.mrf.mxu0  ;;  %1257 = vmatmul.mubr.bf16.vlgmr.msra.gmra.mxu0 %v494_v15 }
 0x114   :  { %v484_v19 = vmul.f32 %v1199_v17, %v435_v18  ;;  %v1230_v53 = vpop.f32.mrf.mxu1 }
 0x115   :  { %v286_v20 = vpop.f32.mrf.mxu0 }
 0x116   :  { %v482_v23 = vmul.f32 %v425_v2, %v286_v20  ;;  %v496_v27 = vpack.c.bf16 %v484_v19, %v483_v24  ;;  %v695_v54 = vpop.f32.mrf.mxu1 }
 0x117   :  { %v1202_v25 = vpop.f32.mrf.mxu0 }
 0x118   :  { %v495_v26 = vpack.c.bf16 %v482_v23, %v481_v22  ;;  %v487_v34 = vmul.f32 %v1202_v25, %v450_v0  ;;  %v1231_v55 = vpop.f32.mrf.mxu1 }
 0x119   :  { %v299_v28 = vpop.f32.mrf.mxu0 }
 0x11a   :  { %1260 = vmatprep.mubr.bf16.mxu0 %v495_v26  ;;  %v485_v32 = vmul.f32 %v440_v57, %v299_v28  ;;  %v698_v56 = vpop.f32.mrf.mxu1 }
 0x11b   :  { %v1203_v29 = vpop.f32.mrf.mxu0  ;;  %1261 = vmatmul.mubr.bf16.gmra.mxu0 %v496_v27 }
 0x11c   :  { %v488_v30 = vmul.f32 %v1203_v29, %v455_v63  ;;  %v1234_v57 = vpop.f32.mrf.mxu1 }
 0x11d   :  { %v302_v31 = vpop.f32.mrf.mxu0 }
 0x11e   :  { %v486_v33 = vmul.f32 %v445_v59, %v302_v31  ;;  %v498_v37 = vpack.c.bf16 %v488_v30, %v487_v34  ;;  %v711_v58 = vpop.f32.mrf.mxu1 }
 0x11f   :  { %v1206_v35 = vpop.f32.mrf.mxu0 }
 0x120   :  { %v497_v36 = vpack.c.bf16 %v486_v33, %v485_v32  ;;  %v491_v46 = vmul.f32 %v1206_v35, %v470_v43  ;;  %v1235_v59 = vpop.f32.mrf.mxu1 }
 0x121   :  { %v315_v38 = vpop.f32.mrf.mxu0 }
 0x122   :  { %1264 = vmatprep.mubr.bf16.mxu1 %v497_v36  ;;  %v489_v44 = vmul.f32 %v460_v13, %v315_v38  ;;  %v714_v60 = vpop.f32.mrf.mxu1 }
 0x123   :  { %v1207_v39 = vpop.f32.mrf.mxu0  ;;  %1265 = vmatmul.mubr.bf16.vlgmr.msra.gmra.mxu1 %v498_v37 }
 0x124   :  { %v492_v41 = vmul.f32 %v1207_v39, %v475_v40  ;;  %v1238_v62 = vpop.f32.mrf.mxu1 }
 0x125   :  { %v318_v42 = vpop.f32.mrf.mxu0 }
 0x126   :  { %v490_v45 = vmul.f32 %v465_v8, %v318_v42  ;;  %v500_v48 = vpack.c.bf16 %v492_v41, %v491_v46  ;;  %v727_v5 = vpop.f32.mrf.mxu1 }
 0x128   :  { %v499_v47 = vpack.c.bf16 %v490_v45, %v489_v44  ;;  %v1239_v14 = vpop.f32.mrf.mxu1 }
 0x12a   :  { %1268 = vmatprep.mubr.bf16.mxu1 %v499_v47  ;;  %v730_v21 = vpop.f32.mrf.mxu1 }
 0x12b   :  { %1269 = vmatmul.mubr.bf16.gmra.mxu1 %v500_v48 }
 0x1d3   :  { %v1258_v61 = vpop.f32.mrf.mxu0 }
 0x1d4   :  { %v833_v0 = vadd.f32 %v1258_v61, %v1226_v49 }
 0x1d5   :  { %v824_v63 = vpop.f32.mrf.mxu0 }
 0x1d6   :  { %v825_v3 = vadd.f32 %v824_v63, %v679_v50  ;;  %v896_v7 = vadd.f32 %v1593_v1, %v833_v0 }
 0x1d7   :  { %v1259_v2 = vpop.f32.mrf.mxu0 }
 0x1d8   :  { %v836_v4 = vadd.f32 %v1259_v2, %v1227_v51  ;;  %v894_v11 = vadd.f32 %v1593_v1, %v825_v3 }
 0x1d9   :  { %v827_v6 = vpop.f32.mrf.mxu0 }
 0x1da   :  { %v897_v8 = vadd.f32 %v1593_v1, %v836_v4  ;;  %v828_v9 = vadd.f32 %v827_v6, %v682_v52 }
 0x1db   :  { %v1262_v10 = vpop.f32.mrf.mxu0 }
 0x1dc   :  { %v1089_v12 = vpack.c.bf16 %v897_v8, %v896_v7  ;;  %v895_v13 = vadd.f32 %v1593_v1, %v828_v9  ;;  %v849_v17 = vadd.f32 %v1262_v10, %v1230_v53 }
 0x1dd   :  { %v840_v15 = vpop.f32.mrf.mxu0 }
 0x1de   :  { %1121 = vst [vmem:[#allocation9 + $0x8] sm:$0xff] %v1089_v12   ;;  %v1084_v16 = vpack.c.bf16 %v895_v13, %v894_v11  ;;  %v841_v19 = vadd.f32 %v840_v15, %v695_v54  ;;  %v900_v23 = vadd.f32 %v1593_v1, %v849_v17 }
 0x1df   :  { %v1263_v18 = vpop.f32.mrf.mxu0 }
 0x1e0   :  { %1085 = vst [vmem:[#allocation9] sm:$0xff] %v1084_v16   ;;  %v852_v20 = vadd.f32 %v1263_v18, %v1231_v55  ;;  %v898_v27 = vadd.f32 %v1593_v1, %v841_v19 }
 0x1e1   :  { %v843_v22 = vpop.f32.mrf.mxu0 }
 0x1e2   :  { %v901_v24 = vadd.f32 %v1593_v1, %v852_v20  ;;  %v844_v25 = vadd.f32 %v843_v22, %v698_v56 }
 0x1e3   :  { %v1266_v26 = vpop.f32.mrf.mxu1 }
 0x1e4   :  { %v1099_v28 = vpack.c.bf16 %v901_v24, %v900_v23  ;;  %v899_v29 = vadd.f32 %v1593_v1, %v844_v25  ;;  %v865_v32 = vadd.f32 %v1266_v26, %v1234_v57 }
 0x1e5   :  { %v856_v30 = vpop.f32.mrf.mxu1 }
 0x1e6   :  { %1123 = vst [vmem:[#allocation9 + $0x18] sm:$0xff] %v1099_v28   ;;  %v1094_v31 = vpack.c.bf16 %v899_v29, %v898_v27  ;;  %v857_v34 = vadd.f32 %v856_v30, %v711_v58  ;;  %v904_v37 = vadd.f32 %v1593_v1, %v865_v32 }
 0x1e7   :  { %v1267_v33 = vpop.f32.mrf.mxu1 }
 0x1e8   :  { %1122 = vst [vmem:[#allocation9 + $0x10] sm:$0xff] %v1094_v31   ;;  %v868_v35 = vadd.f32 %v1267_v33, %v1235_v59  ;;  %v902_v41 = vadd.f32 %v1593_v1, %v857_v34 }
 0x1e9   :  { %v859_v36 = vpop.f32.mrf.mxu1 }
 0x1ea   :  { %v905_v38 = vadd.f32 %v1593_v1, %v868_v35  ;;  %v860_v39 = vadd.f32 %v859_v36, %v714_v60 }
 0x1eb   :  { %v1270_v40 = vpop.f32.mrf.mxu1 }
 0x1ec   :  { %v1109_v42 = vpack.c.bf16 %v905_v38, %v904_v37  ;;  %v903_v43 = vadd.f32 %v1593_v1, %v860_v39  ;;  %v881_v46 = vadd.f32 %v1270_v40, %v1238_v62 }
 0x1ed   :  { %v872_v44 = vpop.f32.mrf.mxu1 }
 0x1ee   :  { %1125 = vst [vmem:[#allocation9 + $0x28] sm:$0xff] %v1109_v42   ;;  %v1104_v45 = vpack.c.bf16 %v903_v43, %v902_v41  ;;  %v873_v48 = vadd.f32 %v872_v44, %v727_v5  ;;  %v908_v51 = vadd.f32 %v1593_v1, %v881_v46 }
 0x1ef   :  { %v1271_v47 = vpop.f32.mrf.mxu1 }
 0x1f0   :  { %1124 = vst [vmem:[#allocation9 + $0x20] sm:$0xff] %v1104_v45   ;;  %v884_v49 = vadd.f32 %v1271_v47, %v1239_v14  ;;  %v906_v54 = vadd.f32 %v1593_v1, %v873_v48 }
 0x1f1   :  { %v875_v50 = vpop.f32.mrf.mxu1 }
 0x1f2   :  { %v909_v52 = vadd.f32 %v1593_v1, %v884_v49  ;;  %v876_v53 = vadd.f32 %v875_v50, %v730_v21 }
 0x1f4   :  { %v1119_v55 = vpack.c.bf16 %v909_v52, %v908_v51  ;;  %v907_v56 = vadd.f32 %v1593_v1, %v876_v53 }
 0x1f6   :  { %1127 = vst [vmem:[#allocation9 + $0x38] sm:$0xff] %v1119_v55   ;;  %v1114_v57 = vpack.c.bf16 %v907_v56, %v906_v54 }
 0x1f8   :  { %1126 = vst [vmem:[#allocation9 + $0x30] sm:$0xff] %v1114_v57  }
 0x1f9   :  { %1408 = shalt.err (!%p1405_p5)
}
 0x1fa   :  { %1001 = dma.vmem_to_hbm [thread:$0]  %s996_s8, 1024, %s1624_s7, [#allocation5], %s1425_s29, %s1425_s29, %s1426_s30  }
 0x1fb   :  { %1421 = dma.done.wait [#allocation5], 1024  }
 0x1fc   :  { %1422 = vsyncadd [#allocation5], 4294966272 }
 0x1fd   :  { %1005 = vsyncpa [#allocation4], 1 }
 0x1fe   :  { %1006 = vsyncpa [#allocation7], 1 }
 0x1ff   :  { %1007 = vsyncpa [#allocation5], 1 }

</bundles_post_ra>
